<compile_context>
chip_gen: v5e
topology: v5e:2x2
jax: 0.10.0
libtpu: 0.0.40
codegen_flags: <defaults>
</compile_context>

<pallas_src>
import jax
import jax.numpy as jnp
import numpy as np
from jax.experimental import pallas as pl
from jax.experimental.pallas import tpu as pltpu

EPS = 1e-5
LANE = 128
# Per-tile budget: tile-size curve plateaus ~85% of HBM roofline past
# ~512 KiB-1 MiB, so 2 MiB is already at the plateau on every generation
# while keeping pipeline buffers + elementwise temps far from the scoped
# VMEM ceiling (v5e/v6e 128 MiB physical, v7x 64 MiB per TensorCore).
_TILE_BUDGET_BYTES = 2 * 1024 * 1024
# Keep at least this many grid steps so both v7x TensorCores get work and the
# BlockSpec DMA pipeline has something to overlap.
_MIN_GRID_STEPS = 4


def _vmem_limit_bytes():
    """Scoped-VMEM limit: half of physical VMEM, capped at 64 MiB."""
    cap = 64 << 20  # conservative fallback (v7x per-TensorCore VMEM)
    try:
        info = pltpu.get_tpu_info()
        cap = int(getattr(info, "vmem_capacity_bytes", cap))
    except Exception:
        pass
    return min(cap // 2, 64 << 20)


def _sublane_step(itemsize):
    # Second-to-last block dim must respect packed sublane tiling:
    # 8 for 4-byte, 16 for 2-byte (bf16), 32 for 1-byte dtypes.
    return {4: 8, 2: 16, 1: 32}.get(itemsize, 8)


def _pick_channel_tile(c, row_bytes, step, n_batch):
    """Largest channel tile (multiple of `step`, divisor of `c`) within budget."""
    divisors = [d for d in range(step, c + 1, step) if c % d == 0]
    fitting = [d for d in divisors if d * row_bytes <= _TILE_BUDGET_BYTES]
    if not fitting:
        # No legal divisor fits: take the smallest legal tile and rely on the
        # explicit vmem_limit_bytes headroom.
        # TODO(synk): for gigantic spatial maps a split over H*W with a
        # reduction grid axis + accumulator would be needed; not implemented.
        return divisors[0]
    tc = max(fitting)
    # Shrink (when possible) until there are enough grid steps to feed both
    # v7x TensorCores / keep the pipeline busy.
    while n_batch * (c // tc) < _MIN_GRID_STEPS:
        smaller = [d for d in fitting if d < tc]
        if not smaller:
            break
        tc = max(smaller)
    return tc


def _make_kernel(hw_valid, needs_mask):
    inv_hw = 1.0 / hw_valid
    # Unbiased (ddof=1) denominator; hw == 1 -> NaN exactly like torch.var.
    inv_denom = (1.0 / (hw_valid - 1)) if hw_valid > 1 else float("nan")

    def kernel(idx_ref, x_self_ref, x_swap_ref, o_ref):
        # idx_ref     : (N,) int32 in SMEM, consumed only by the index_maps.
        # x_self_ref  : (1, Tc, HWp) stats source (row n, de-normalization target)
        # x_swap_ref  : (1, Tc, HWp) content of row idx_swap[n]
        del idx_ref

        x_self = x_self_ref[...].astype(jnp.float32)
        x_swap = x_swap_ref[...].astype(jnp.float32)

        # Means: spatial zero-padding does not perturb the sums.
        mean_s = jnp.sum(x_self, axis=-1, keepdims=True) * jnp.float32(inv_hw)
        mean_w = jnp.sum(x_swap, axis=-1, keepdims=True) * jnp.float32(inv_hw)

        d_s = x_self - mean_s
        d_w = x_swap - mean_w
        if needs_mask:
            lane = jax.lax.broadcasted_iota(jnp.int32, x_self.shape, x_self.ndim - 1)
            valid = lane < hw_valid
            d_s = jnp.where(valid, d_s, 0.0)
            d_w = jnp.where(valid, d_w, 0.0)

        # Two-pass unbiased variance: free under the memory bound, no
        # catastrophic cancellation, always >= 0.
        var_s = jnp.sum(d_s * d_s, axis=-1, keepdims=True) * jnp.float32(inv_denom)
        var_w = jnp.sum(d_w * d_w, axis=-1, keepdims=True) * jnp.float32(inv_denom)

        # Fused de/re-normalization:
        #   (x_swap - mean_w)/sqrt(var_w+eps) * sqrt(var_s+eps) + mean_s
        scale = jnp.sqrt(var_s + EPS) * jax.lax.rsqrt(var_w + EPS)
        y = d_w * scale + mean_s

        # clamp(-1, 1), rescale to [0, 1], floor non-positive values to 1e-6
        y = jnp.clip(y, -1.0, 1.0)
        y = y * 0.5 + 0.5
        y = jnp.where(y <= 0.0, jnp.float32(1e-6), y)

        o_ref[...] = y.astype(o_ref.dtype)

    return kernel


def content_randomization(x, idx_swap, training=True):
    """Pallas implementation of ContentRandomization.forward.

    x        : (N, C, H, W) float32 or bfloat16
    idx_swap : (N,) int permutation (stand-in for torch.randperm(N))
    """
    if not training:
        return x  # eval branch is identity

    N, C, H, W = x.shape
    HW = H * W
    itemsize = jnp.dtype(x.dtype).itemsize
    step = _sublane_step(itemsize)

    # Lane-dense layout: spatial axis on the 128-lane dim, padded to a lane
    # multiple so stores are full vst (no masked partial stores). Channel axis
    # padded to the packed-sublane step so tiling is always legal. Padding is
    # zeros -> padded rows produce finite values and are sliced off below.
    HWp = pl.cdiv(HW, LANE) * LANE
    Cp = pl.cdiv(C, step) * step

    xf = x.reshape(N, C, HW)
    if (Cp != C) or (HWp != HW):
        xf = jnp.pad(xf, ((0, 0), (0, Cp - C), (0, HWp - HW)))

    idx_swap = idx_swap.astype(jnp.int32)

    row_bytes = HWp * itemsize
    Tc = _pick_channel_tile(Cp, row_bytes, step, N)
    n_ctiles = Cp // Tc

    kernel = _make_kernel(HW, HWp != HW)

    grid_spec = pltpu.PrefetchScalarGridSpec(
        num_scalar_prefetch=1,
        grid=(N, n_ctiles),
        in_specs=[
            # x[n, c-tile]: statistics used for de-normalization.
            pl.BlockSpec((1, Tc, HWp), lambda n, c, idx: (n, c, 0)),
            # x[idx_swap[n], c-tile]: permuted content, gathered directly in
            # the BlockSpec via the scalar-prefetched permutation (no extra
            # HBM round trip for x[idx_swap] in the wrapper).
            # TODO(synk): if xprof shows exposed DMA on this gathered stream,
            # sweep pipeline_mode=pl.Buffered(3) on this spec.
            pl.BlockSpec((1, Tc, HWp), lambda n, c, idx: (idx[n], c, 0)),
        ],
        out_specs=pl.BlockSpec((1, Tc, HWp), lambda n, c, idx: (n, c, 0)),
    )

    elems = N * Cp * HWp
    cost = pl.CostEstimate(
        flops=12 * elems,                    # stats + normalize + clip/affine
        transcendentals=2 * N * Cp,          # sqrt + rsqrt per (n, c)
        bytes_accessed=3 * elems * itemsize, # 2 reads + 1 write (HBM floor)
    )

    out = pl.pallas_call(
        kernel,
        out_shape=jax.ShapeDtypeStruct((N, Cp, HWp), x.dtype),
        grid_spec=grid_spec,
        compiler_params=pltpu.CompilerParams(
            dimension_semantics=("parallel", "parallel"),
            vmem_limit_bytes=_vmem_limit_bytes(),
        ),
        cost_estimate=cost,
    )(idx_swap, xf, xf)

    if (Cp != C) or (HWp != HW):
        out = out[:, :C, :HW]
    return out.reshape(N, C, H, W)


def _reference(x, idx_swap):
    """Pure-JAX reference mirroring the PyTorch forward (training=True)."""
    N, C, H, W = x.shape
    xf = x.astype(jnp.float32).reshape(N, C, -1)
    mean = xf.mean(-1, keepdims=True)
    var = xf.var(-1, keepdims=True, ddof=1)
    xn = (xf - mean) / jnp.sqrt(var + EPS)
    xn = xn[idx_swap]
    y = xn * jnp.sqrt(var + EPS) + mean
    y = y.reshape(N, C, H, W)
    y = jnp.clip(y, -1.0, 1.0)
    y = y / 2.0 + 0.5
    y = jnp.where(y <= 0.0, 1e-6, y)
    return y.astype(x.dtype)


if __name__ == "__main__":
    key = jax.random.PRNGKey(0)

    # TODO(synk): torch.randperm's host-side RNG has no in-kernel equivalent;
    # the permutation is generated outside and passed in as idx_swap.
    cases = [
        ((2, 4, 16, 16), jnp.float32),    # C padded 4 -> 8
        ((4, 8, 32, 32), jnp.float32),    # no padding
        ((2, 8, 7, 7), jnp.float32),      # HW=49 -> padded to 128, masked stats
        ((2, 16, 14, 14), jnp.bfloat16),  # bf16 I/O, HW=196 -> padded to 256
    ]
    for shape, dtype in cases:
        key, kx, kp = jax.random.split(key, 3)
        x = jax.random.normal(kx, shape, dtype=jnp.float32).astype(dtype)
        idx_swap = jax.random.permutation(kp, shape[0]).astype(jnp.int32)

        out = jax.block_until_ready(content_randomization(x, idx_swap, training=True))
        ref = _reference(x, idx_swap)

        tol = 1e-5 if dtype == jnp.float32 else 1e-2
        np.testing.assert_allclose(
            np.asarray(out.astype(jnp.float32)),
            np.asarray(ref.astype(jnp.float32)),
            rtol=tol, atol=tol)

    print("KERNEL_OK")
</pallas_src>

<mosaic_0001>
module attributes {stable_mosaic.version = 11 : i64} {
  func.func @kernel(%arg0: i32, %arg1: i32, %arg2: memref<2xi32, #tpu.memory_space<smem>>, %arg3: memref<1x8x256xf32, #tpu.memory_space<vmem>>, %arg4: memref<1x8x256xf32, #tpu.memory_space<vmem>>, %arg5: memref<1x8x256xf32, #tpu.memory_space<vmem>>) attributes {dimension_semantics = [#tpu.dimension_semantics<parallel>, #tpu.dimension_semantics<parallel>], iteration_bounds = array<i64: 2, 1>, scalar_prefetch = 1 : i64, scratch_operands = 0 : i64, tpu.core_type = #tpu.core_type<tc>, window_params = [{transform_indices = @transform_0, window_bounds = array<i64: 1, 8, 256>}, {transform_indices = @transform_1, window_bounds = array<i64: 1, 8, 256>}, {transform_indices = @transform_2, window_bounds = array<i64: 1, 8, 256>}]} {
    %c0 = arith.constant 0 : index
    %c0_0 = arith.constant 0 : index
    %c0_1 = arith.constant 0 : index
    %0 = vector.load %arg3[%c0, %c0_0, %c0_1] : memref<1x8x256xf32, #tpu.memory_space<vmem>>, vector<1x8x256xf32>
    %c0_2 = arith.constant 0 : index
    %c0_3 = arith.constant 0 : index
    %c0_4 = arith.constant 0 : index
    %1 = vector.load %arg4[%c0_2, %c0_3, %c0_4] : memref<1x8x256xf32, #tpu.memory_space<vmem>>, vector<1x8x256xf32>
    %cst = arith.constant dense<0.000000e+00> : vector<1x8xf32>
    %2 = vector.multi_reduction <add>, %0, %cst [2] : vector<1x8x256xf32> to vector<1x8xf32>
    %3 = vector.shape_cast %2 : vector<1x8xf32> to vector<1x8x1xf32>
    %cst_5 = arith.constant 3.906250e-03 : f32
    %4 = vector.broadcast %cst_5 : f32 to vector<1x8x1xf32>
    %5 = arith.mulf %3, %4 : vector<1x8x1xf32>
    %cst_6 = arith.constant dense<0.000000e+00> : vector<1x8xf32>
    %6 = vector.multi_reduction <add>, %1, %cst_6 [2] : vector<1x8x256xf32> to vector<1x8xf32>
    %7 = vector.shape_cast %6 : vector<1x8xf32> to vector<1x8x1xf32>
    %cst_7 = arith.constant 3.906250e-03 : f32
    %8 = vector.broadcast %cst_7 : f32 to vector<1x8x1xf32>
    %9 = arith.mulf %7, %8 : vector<1x8x1xf32>
    %10 = vector.broadcast %5 : vector<1x8x1xf32> to vector<1x8x256xf32>
    %11 = arith.subf %0, %10 : vector<1x8x256xf32>
    %12 = vector.broadcast %9 : vector<1x8x1xf32> to vector<1x8x256xf32>
    %13 = arith.subf %1, %12 : vector<1x8x256xf32>
    %14 = arith.mulf %11, %11 : vector<1x8x256xf32>
    %cst_8 = arith.constant dense<0.000000e+00> : vector<1x8xf32>
    %15 = vector.multi_reduction <add>, %14, %cst_8 [2] : vector<1x8x256xf32> to vector<1x8xf32>
    %16 = vector.shape_cast %15 : vector<1x8xf32> to vector<1x8x1xf32>
    %cst_9 = arith.constant 0.00392156886 : f32
    %17 = vector.broadcast %cst_9 : f32 to vector<1x8x1xf32>
    %18 = arith.mulf %16, %17 : vector<1x8x1xf32>
    %19 = arith.mulf %13, %13 : vector<1x8x256xf32>
    %cst_10 = arith.constant dense<0.000000e+00> : vector<1x8xf32>
    %20 = vector.multi_reduction <add>, %19, %cst_10 [2] : vector<1x8x256xf32> to vector<1x8xf32>
    %21 = vector.shape_cast %20 : vector<1x8xf32> to vector<1x8x1xf32>
    %cst_11 = arith.constant 0.00392156886 : f32
    %22 = vector.broadcast %cst_11 : f32 to vector<1x8x1xf32>
    %23 = arith.mulf %21, %22 : vector<1x8x1xf32>
    %cst_12 = arith.constant 9.99999974E-6 : f32
    %24 = vector.broadcast %cst_12 : f32 to vector<1x8x1xf32>
    %25 = arith.addf %18, %24 : vector<1x8x1xf32>
    %26 = math.sqrt %25 : vector<1x8x1xf32>
    %cst_13 = arith.constant 9.99999974E-6 : f32
    %27 = vector.broadcast %cst_13 : f32 to vector<1x8x1xf32>
    %28 = arith.addf %23, %27 : vector<1x8x1xf32>
    %29 = math.rsqrt %28 : vector<1x8x1xf32>
    %30 = arith.mulf %26, %29 : vector<1x8x1xf32>
    %31 = vector.broadcast %30 : vector<1x8x1xf32> to vector<1x8x256xf32>
    %32 = arith.mulf %13, %31 : vector<1x8x256xf32>
    %33 = vector.broadcast %5 : vector<1x8x1xf32> to vector<1x8x256xf32>
    %34 = arith.addf %32, %33 : vector<1x8x256xf32>
    %cst_14 = arith.constant -1.000000e+00 : f32
    %cst_15 = arith.constant 1.000000e+00 : f32
    %35 = vector.broadcast %cst_14 : f32 to vector<1x8x256xf32>
    %36 = arith.maximumf %35, %34 : vector<1x8x256xf32>
    %37 = vector.broadcast %cst_15 : f32 to vector<1x8x256xf32>
    %38 = arith.minimumf %37, %36 : vector<1x8x256xf32>
    %cst_16 = arith.constant 5.000000e-01 : f32
    %39 = vector.broadcast %cst_16 : f32 to vector<1x8x256xf32>
    %40 = arith.mulf %38, %39 : vector<1x8x256xf32>
    %cst_17 = arith.constant 5.000000e-01 : f32
    %41 = vector.broadcast %cst_17 : f32 to vector<1x8x256xf32>
    %42 = arith.addf %40, %41 : vector<1x8x256xf32>
    %cst_18 = arith.constant 0.000000e+00 : f32
    %43 = vector.broadcast %cst_18 : f32 to vector<1x8x256xf32>
    %44 = arith.cmpf ole, %42, %43 : vector<1x8x256xf32>
    %cst_19 = arith.constant 9.99999997E-7 : f32
    %45 = vector.broadcast %cst_19 : f32 to vector<1x8x256xf32>
    %46 = arith.select %44, %45, %42 : vector<1x8x256xi1>, vector<1x8x256xf32>
    %c0_20 = arith.constant 0 : index
    %c0_21 = arith.constant 0 : index
    %c0_22 = arith.constant 0 : index
    %47 = vector.load %arg5[%c0_20, %c0_21, %c0_22] : memref<1x8x256xf32, #tpu.memory_space<vmem>>, vector<1x8x256xf32>
    tpu.vector_store %arg5[%c0_20, %c0_21, %c0_22], %46 {strides = array<i32>} : memref<1x8x256xf32, #tpu.memory_space<vmem>>, vector<1x8x256xf32>,
    return
  }
  func.func @transform_0(%arg0: i32, %arg1: i32, %arg2: memref<2xi32, #tpu.memory_space<smem>>) -> (i32, i32, i32) {
    %c0_i32 = arith.constant 0 : i32
    %c0_i32_0 = arith.constant 0 : i32
    return %arg0, %arg1, %c0_i32 : i32, i32, i32
  }
  func.func @transform_1(%arg0: i32, %arg1: i32, %arg2: memref<2xi32, #tpu.memory_space<smem>>) -> (i32, i32, i32) {
    %0 = arith.index_cast %arg0 : i32 to index
    %1 = memref.load %arg2[%0] : memref<2xi32, #tpu.memory_space<smem>>
    %c0_i32 = arith.constant 0 : i32
    %c0_i32_0 = arith.constant 0 : i32
    return %1, %arg1, %c0_i32 : i32, i32, i32
  }
  func.func @transform_2(%arg0: i32, %arg1: i32, %arg2: memref<2xi32, #tpu.memory_space<smem>>) -> (i32, i32, i32) {
    %c0_i32 = arith.constant 0 : i32
    %c0_i32_0 = arith.constant 0 : i32
    return %arg0, %arg1, %c0_i32 : i32, i32, i32
  }
}

</mosaic_0001>

<bundles_post_ra>
// kernel: tpu_custom_call.1
= control target key start
LH: loop header
LB: loop body
LE: loop exit
PB: predicated region body
PF: predicated region fallthrough
CT: control target
= control target key end

     0   :  { %s747_s15 = smov [#allocation3]   ;;  %s995_s0 = inlined_call_operand.hbm [shape: s32[2], index: 0, kind: input, shape index: {}]   ;;  %s996_s1 = inlined_call_operand.hbm [shape: f32[2,8,256], index: 1, kind: input, shape index: {}]   ;;  %s997_s2 = inlined_call_operand.hbm [shape: f32[2,8,256], index: 2, kind: input, shape index: {}]   ;;  %s998_s3 = inlined_call_operand.hbm [shape: f32[2,8,256], index: 3, kind: output, shape index: {}]  }
   0x1   :  { %1002 = sst [smem:[#allocation19_spill]] %s996_s1  ;;  %s9_s14 = sshll.u32 %s995_s0, 4  ;;  %s10_s14 = int_to_ptr.hbm [resolvable:$true] %s9_s14 }
   0x2   :  { %12 = dma.hbm_to_smem %s10_s14, 16, %s747_s15, [#allocation2] }
   0x3   :  { %697 = dma.done.wait [#allocation2], 16 }
   0x4   :  { %698 = vsyncadd [#allocation2], 4294967280 }
   0x5   :  { %15 = sfence }
   0x6   :  { %16 = vsyncpa [#allocation5], 0 }
   0x7   :  { %18 = vsyncpa [#allocation5 + $0x1], 0 }
   0x8   :  { %19 = vsyncpa [#allocation8], 0 }
   0x9   :  { %21 = vsyncpa [#allocation8 + $0x1], 0 }
   0xa   :  { %22 = vsyncpa [#allocation6], 0 }
   0xb   :  { %24 = vsyncpa [#allocation6 + $0x1], 0  ;;  %s771_s16 = smov 0   ;;  %s773_s17 = smov 0  }
   0xc   :  { %s775_s18 = smov 0   ;;  %s777_s19 = smov 0  }
   0xd   :  { %s779_s0 = smov 0   ;;  %s781_s20 = smov 0  }
   0xe   :  { %s783_s21 = smov 0   ;;  %s785_s22 = smov 0  }
   0xf   :  { %s787_s23 = smov 0  }
  0x10 LB: > { %1003 = sst [smem:[#allocation16_spill]] %s741_s22  ;;  %s437_s24 = sadd.s32 4294967295, %s745_s23   ;;  %s745_s23 = sphi %s787_s23, %s30_s23   ;;  %s741_s22 = sphi %s785_s22, %s1021_s22   ;;  %s737_s21 = sphi %s783_s21, %s1020_s21   ;;  %s733_s20 = sphi %s781_s20, %s1027_s20   ;;  %s729_s0 = sphi %s779_s0, %s1026_s0   ;;  %s725_s19 = sphi %s777_s19, %s1025_s19   ;;  %s721_s18 = sphi %s775_s18, %s1024_s18   ;;  %s717_s17 = sphi %s773_s17, %s1023_s17   ;;  %s713_s16 = sphi %s771_s16, %s1022_s16  }
  0x11   : > { %s438_s25 = sadd.s32 4294967294, %s745_s23   ;;  %s42_s26 = sadd.s32 1, %s741_s22 }
  0x12   : > { %s51_s27 = sadd.s32 1, %s733_s20  ;;  %p44_p0 = scmp.ge.s32.totalorder %s42_s26, 2 }
  0x13   : > { %p58_p1 = scmp.ne.s32.totalorder %s733_s20, %s729_s0  ;;  %p59_p2 = scmp.eq.s32.totalorder %s745_s23, 0 }
  0x14   : > { %p64_p3 = scmp.ne.s32.totalorder %s729_s0, %s725_s19  ;;  %s1029_s26 = smov (%p44_p0, %s42_s26), 0 }
  0x15   : > { %1004 = sst [smem:[#allocation17_spill]] %s1029_s26  ;;  %p832_p4 = por %p59_p2, %p58_p1 }
  0x16   : > { %p836_p5 = scmp.eq.s32.totalorder %s437_s24, 0  ;;  %s46_s30 = ssub.s32 %s741_s22, %s1029_s26 }
  0x17   : > { %s74_s4 = sld [smem:[#allocation3 + %s741_s22]]  ;;  %p49_p6 = scmp.eq.s32.totalorder %s46_s30, 0 }
  0x18   : > { %p848_p7 = por %p836_p5, %p64_p3  ;;  %s75_s6 = sld [smem:[#allocation3 + %s1029_s26]] }
  0x19   : > { %p120_p8 = scmp.eq.s32.totalorder %s437_s24, 1  ;;  %p126_p10 = scmp.eq.s32.totalorder %s438_s25, 1 }
  0x1a   : > { %s854_s7 = scalar_select %p49_p6, %s733_s20, %s51_s27  }
  0x1b   : > { %p859_p9 = por %p120_p8, %p58_p1  ;;  %p999_p12 = scmp.lt.s32.totalorder %s745_s23, 2 }
  0x1c   : > { %1008 = sst [smem:[#allocation18_spill]] %s854_s7  ;;  %p868_p13 = por %p126_p10, %p64_p3 }
  0x1d   : > { %s146_s10 = sand.u32 1, %s733_s20   ;;  %s458_s12 = sshll.u32 %s741_s22, 4 }
  0x1e   : > { %s441_s11 = sshll.u32 %s146_s10, 4  ;;  %s1011_s1 = sld [smem:[#allocation19_spill]] }
  0x1f   : > { %s150_s24 = scalar_lea.vmem [#allocation4], %s441_s11  ;;  %p470_p0 = pnand %p999_p12, %p832_p4 }
  0x20   : > { %s161_s25 = sshll.u32 %s150_s24, 4  ;;  %p447_p1 = scmp.ge.s32.totalorder %s745_s23, 1  ;;  %s162_s25 = int_to_ptr.vmem [resolvable:$true] %s161_s25 }
  0x21   : > { %p189_p3 = scmp.lt.s32.totalorder %s745_s23, 3  ;;  %s147_s30 = scalar_lea.sflag [#allocation5], %s146_s10 }
  0x22   : > { %s81_s13 = sadd.s32 1, %s721_s18  ;;  %p88_p10 = scmp.ne.s32.totalorder %s721_s18, %s717_s17 }
  0x23   : > { %p883_p6 = pnand %p447_p1, %p189_p3  ;;  %p94_p11 = scmp.ne.s32.totalorder %s717_s17, %s713_s16 }
  0x24   : > { %s157_s15 = scalar_lea.hbm %s1011_s1, %s458_s12  ;;  %s76_s12 = ssub.s32 %s74_s4, %s75_s6 }
  0x25   : > { %s159_s27 = sshll.u32 %s157_s15, 4  ;;  %p79_p8 = scmp.eq.s32.totalorder %s76_s12, 0  ;;  %s160_s27 = int_to_ptr.hbm [resolvable:$true] %s159_s27 }
  0x26   : > { %472 = dma.hbm_to_vmem [thread:$0]  (!%p470_p0), %s160_s27, 256, %s162_s25, %s147_s30  }
  0x27   : > { %s168_s28 = sand.u32 1, %s721_s18   ;;  %p90_p4 = por %p88_p10, %p59_p2 }
  0x28   : > { %s894_s14 = scalar_select %p79_p8, %s721_s18, %s81_s13  }
  0x29   : > { %p900_p12 = por %p94_p11, %p836_p5  ;;  %s444_s15 = sshll.u32 %s168_s28, 4 }
  0x2a   : > { %p1014_p0 = scmp.lt.s32.totalorder %s745_s23, 2  ;;  %s172_s25 = scalar_lea.vmem [#allocation7], %s444_s15 }
  0x2b   : > { %s462_s4 = scalar_select %p90_p4, [#allocation3], [#allocation10] }
  0x2c   : > { %p906_p1 = pnand %p1014_p0, %p90_p4  ;;  %p1016_p3 = pmov %p1014_p0 }
  0x2d   : > { %s463_s6 = scalar_select %p90_p4, %s741_s22, 0 }
  0x2e   : > { %s1031_s4 = smov (!%p1016_p3, %s462_s4), [#allocation11]  ;;  %p1017_p8 = pmov %p1014_p0 }
  0x2f   : > { %s184_s29 = sshll.u32 %s172_s25, 4  ;;  %s169_s26 = scalar_lea.sflag [#allocation8], %s168_s28  ;;  %s185_s29 = int_to_ptr.vmem [resolvable:$true] %s184_s29 }
  0x30   : > { %s1033_s6 = smov (!%p1017_p8, %s463_s6), 0  ;;  %p607_p5 = pneg %p906_p1 }
  0x31   : > { %s173_s16 = sld [smem:[%s1031_s4 + %s1033_s6]]  ;;  %s610_s6 = scalar_lea.hbm %s997_s2, 32 }
  0x37   : > { %s459_s27 = sshll.u32 %s173_s16, 4 }
  0x38   : > { %s180_s13 = scalar_lea.hbm %s997_s2, %s459_s27 }
  0x39   : > { %s182_s1 = sshll.u32 %s180_s13, 4  ;;  %s183_s1 = int_to_ptr.hbm [resolvable:$true] %s182_s1 }
  0x3a   : > { %s603_s7 = sshra.s32 %s183_s1, 4  ;;  %s604_s7 = int_to_ptr.hbm [resolvable:$true] %s603_s7 }
  0x3b   : > { %s605_s22 = scalar_lea.hbm %s604_s7, 16  ;;  %p611_p4 = scmp.lt.s32.totalorder %s604_s7, %s997_s2 }
  0x3c   : > { %p606_p2 = scmp.ne.s32.totalorder %s604_s7, %s605_s22  ;;  %p612_p0 = scmp.lt.s32.totalorder %s610_s6, %s605_s22 }
  0x3e   : > { %p608_p11 = pnand %p607_p5, %p606_p2  ;;  %p613_p3 = por %p612_p0, %p611_p4 }
  0x40   : > { %p609_p10 = pneg %p608_p11 }
  0x42   : > { %p614_p8 = pnand %p613_p3, %p609_p10 }
  0x44   : > { %617 = shalt.err (!%p614_p8)
}
  0x45   : > { %477 = dma.hbm_to_vmem [thread:$0]  (!%p906_p1), %s183_s1, 256, %s185_s29, %s169_s26  }
  0x46   : > { %193 = sbr.rel (%p883_p6) target bundleno = 371 (0x173), region = 28  ;;  %s931_s28 = sand.u32 (!%p883_p6), 1, %s729_s0  }
  0x47   : > { %s448_s27 = sshll.u32 (!%p883_p6), %s931_s28, 4  ;;  %s196_s30 = scalar_lea.sflag (!%p883_p6), [#allocation5], %s931_s28 }
  0x48   : > { %s199_s22 = scalar_lea.vmem (!%p883_p6), [#allocation4], %s448_s27 }
  0x4b   : > { %700 = dma.done.wait (%p848_p7), %s196_s30, 256  }
  0x4c   : > { %702 = vsyncadd (%p848_p7), %s196_s30, 4294967040  ;;  %s205_s1 = sand.u32 1, %s717_s17  }
  0x4d   : > { %s449_s26 = sshll.u32 %s205_s1, 4  ;;  %s206_s7 = scalar_lea.sflag [#allocation8], %s205_s1 }
  0x4e   : > { %s209_s11 = scalar_lea.vmem [#allocation7], %s449_s26 }
  0x4f   : > { %704 = dma.done.wait (%p900_p12), %s206_s7, 256  }
  0x50   : > { %706 = vsyncadd (%p900_p12), %s206_s7, 4294967040  ;;  %v237_v0 = vld [vmem:[%s199_s22] sm:$0xff]  ;;  %v238_v1 = vld [vmem:[%s199_s22 + $0x8] sm:$0xff]  ;;  %s460_s5 = sshll.u32 %s737_s21, 4  ;;  %s235_s12 = scalar_lea.vmem [#allocation9], %s448_s27 }
  0x51   : > { %v241_v2 = vadd.f32 %v238_v1, %v237_v0  ;;  %v239_v3 = vld [vmem:[%s209_s11] sm:$0xff]  ;;  %v240_v4 = vld [vmem:[%s209_s11 + $0x8] sm:$0xff]  ;;  %s322_s29 = scalar_lea.hbm %s998_s3, %s460_s5  ;;  %s324_s13 = sshll.u32 %s235_s12, 4  ;;  %s325_s13 = int_to_ptr.vmem [resolvable:$true] %s324_s13 }
  0x52   : > { %v245_v5 = vadd.f32 %v240_v4, %v239_v3  ;;  %s326_s4 = sshll.u32 %s322_s29, 4  ;;  %s309_s21 = scalar_lea.sflag [#allocation6], %s931_s28  ;;  %s327_s4 = int_to_ptr.hbm [resolvable:$true] %s326_s4 }
  0x53   : > { %242 = vadd.xlane.f32.xlu0 %v241_v2  ;;  %s647_s15 = sshra.s32 %s327_s4, 4  ;;  %s653_s27 = scalar_lea.hbm %s998_s3, 32  ;;  %s648_s15 = int_to_ptr.hbm [resolvable:$true] %s647_s15 }
  0x54   : > { %s649_s6 = scalar_lea.hbm %s648_s15, 16  ;;  %p654_p1 = scmp.lt.s32.totalorder %s648_s15, %s998_s3 }
  0x55   : > { %p650_p7 = scmp.ne.s32.totalorder %s648_s15, %s649_s6  ;;  %p655_p2 = scmp.lt.s32.totalorder %s653_s27, %s649_s6 }
  0x57   : > { %p651_p12 = pnand %p650_p7, %p859_p9  ;;  %p656_p5 = por %p655_p2, %p654_p1 }
  0x59   : > { %p652_p6 = pneg %p651_p12 }
  0x5b   : > { %246 = vadd.xlane.f32.xlu0 %v245_v5  ;;  %p657_p11 = pnand %p656_p5, %p652_p6 }
  0xc6   : > { %v243_v6 = vpop.xlane.xlu0 %242 }
  0xc7   : > { %v244_v7 = vmul.f32 0.00390625, %v243_v6 }
  0xc9   : > { %v249_v8 = vsub.f32 %v237_v0, %v244_v7  ;;  %v250_v9 = vsub.f32 %v238_v1, %v244_v7 }
  0xcb   : > { %v253_v10 = vmul.f32 %v249_v8, %v249_v8  ;;  %v254_v11 = vmul.f32 %v250_v9, %v250_v9 }
  0xcd   : > { %v255_v12 = vadd.f32 %v254_v11, %v253_v10 }
  0xce   : > { %v247_v13 = vpop.xlane.xlu0 %246 }
  0xcf   : > { %v248_v14 = vmul.f32 0.00390625, %v247_v13  ;;  %256 = vadd.xlane.f32.xlu1 %v255_v12 }
  0xd1   : > { %v251_v15 = vsub.f32 %v239_v3, %v248_v14  ;;  %v252_v16 = vsub.f32 %v240_v4, %v248_v14 }
  0xd3   : > { %v259_v17 = vmul.f32 %v251_v15, %v251_v15  ;;  %v260_v18 = vmul.f32 %v252_v16, %v252_v16 }
  0xd5   : > { %v261_v19 = vadd.f32 %v260_v18, %v259_v17 }
  0xd7   : > { %262 = vadd.xlane.f32.xlu1 %v261_v19 }
 0x142   : > { %v257_v20 = vpop.xlane.xlu1 %256 }
 0x143   : > { %v258_v21 = vmul.f32 0.003921569, %v257_v20 }
 0x145   : > { %v265_v22 = vadd.f32 1e-05, %v258_v21 }
 0x147   : > { %557 = vrsqrt.f32 %v265_v22  ;;  %vm273_vm0 = vcmp.eq.f32.partialorder %v265_v22, inf  ;;  %v276_v39 = vand.u32 2147483648, %v265_v22  ;;  %vm275_vm3 = vcmp.eq.f32.partialorder %v265_v22, 0.0 }
 0x14a   : > { %v263_v23 = vpop.xlane.xlu1 %262 }
 0x14b   : > { %v264_v24 = vmul.f32 0.003921569, %v263_v23 }
 0x14d   : > { %v558_v25 = vpop.eup %557  ;;  %v278_v26 = vadd.f32 1e-05, %v264_v24 }
 0x14e   : > { %v267_v27 = vmul.f32 %v558_v25, %v265_v22 }
 0x14f   : > { %559 = vrsqrt.f32 %v278_v26  ;;  %vm285_vm2 = vweird.f32 %v278_v26 }
 0x150   : > { %v268_v28 = vmul.f32 %v558_v25, %v267_v27 }
 0x152   : > { %v269_v29 = vmul.f32 0.5, %v268_v28 }
 0x154   : > { %v270_v30 = vsub.f32 1.5, %v269_v29 }
 0x155   : > { %v560_v31 = vpop.eup %559 }
 0x156   : > { %v271_v32 = vmul.f32 %v558_v25, %v270_v30  ;;  %v280_v33 = vmul.f32 %v560_v31, %v278_v26  ;;  %vm286_vm1 = vweird.f32 %v560_v31 }
 0x157   : > { %vm287_vm4 = vmor %vm285_vm2, %vm286_vm1 }
 0x158   : > { %v281_v34 = vmul.f32 %v560_v31, %v280_v33  ;;  %v272_v35 = vmul.f32 %v271_v32, %v265_v22 }
 0x15a   : > { %v282_v36 = vmul.f32 0.5, %v281_v34  ;;  %v274_v38 = vsel %vm273_vm0, %v265_v22, %v272_v35 }
 0x15b   : > { %v277_v41 = vsel %vm275_vm3, %v276_v39, %v274_v38 }
 0x15c   : > { %v283_v37 = vsub.f32 1.5, %v282_v36 }
 0x15e   : > { %v284_v40 = vmul.f32 %v560_v31, %v283_v37 }
 0x160   : > { %v288_v42 = vsel %vm287_vm4, %v560_v31, %v284_v40 }
 0x161   : > { %v289_v43 = vmul.f32 %v288_v42, %v277_v41 }
 0x163   : > { %v290_v44 = vmul.f32 %v289_v43, %v251_v15  ;;  %v291_v45 = vmul.f32 %v289_v43, %v252_v16 }
 0x165   : > { %v292_v46 = vadd.f32 %v290_v44, %v244_v7  ;;  %v293_v47 = vadd.f32 %v291_v45, %v244_v7 }
 0x167   : > { %v451_v48 = vclamps-f32 %v292_v46, 1.0  ;;  %v452_v49 = vclamps-f32 %v293_v47, 1.0 }
 0x169   : > { %v298_v50 = vmul.f32 0.5, %v451_v48  ;;  %v299_v51 = vmul.f32 0.5, %v452_v49 }
 0x16b   : > { %v300_v52 = vadd.f32 0.5, %v298_v50  ;;  %v301_v53 = vadd.f32 0.5, %v299_v51 }
 0x16d   : > { %vm302_vm5 = vcmp.le.f32.partialorder %v300_v52, 0.0  ;;  %vm303_vm6 = vcmp.le.f32.partialorder %v301_v53, 0.0 }
 0x16e   : > { %v304_v54 = vsel %vm302_vm5, 1e-06, %v300_v52  ;;  %v305_v55 = vsel %vm303_vm6, 1e-06, %v301_v53 }
 0x16f   : > { %306 = vst [vmem:[%s235_s12] sm:$0xff] %v304_v54 }
 0x170   : > { %307 = vst [vmem:[%s235_s12 + $0x8] sm:$0xff] %v305_v55 }
 0x171   : > { %660 = shalt.err (!%p657_p11)
}
 0x172   : > { %467 = dma.vmem_to_hbm [thread:$0]  (%p859_p9), %s325_s13, 256, %s327_s4, %s309_s21  }
 0x173 PF: > { %s338_s28 = sand.u32 1, %s725_s19   ;;  %p1018_p10 = scmp.ge.s32.totalorder %s745_s23, 2 }
 0x174   : > { %s339_s1 = scalar_lea.sflag [#allocation6], %s338_s28 }
 0x175   : > { %p479_p4 = pnand %p1018_p10, %p868_p13 }
 0x177   : > { %p480_p0 = pneg %p479_p4 }
 0x179   : > { %708 = dma.done.wait (%p480_p0), %s339_s1, 256  }
 0x17a   : > { %710 = vsyncadd (%p480_p0), %s339_s1, 4294967040  ;;  %s30_s23 = sadd.s32 1, %s745_s23   ;;  %s1019_s8 = sld [smem:[#allocation18_spill]] }
 0x17b   : > { %p27_p3 = scmp.ge.s32.totalorder %s30_s23, 4   ;;  %s1020_s21 = sld [smem:[#allocation16_spill]] }
 0x17c   : > { %s1021_s22 = sld [smem:[#allocation17_spill]]  ;;  %s1022_s16 = smov %s717_s17 }
 0x17d   : > { %s1023_s17 = smov %s721_s18  ;;  %s1024_s18 = smov %s894_s14 }
 0x17e   : > { %s1025_s19 = smov %s729_s0  ;;  %s1026_s0 = smov %s733_s20 }
 0x17f   :  { %29 = sbr.rel (!%p27_p3) target bundleno = 16 (0x10), region = 86 }
 0x180   : > { %s1027_s20 = smov %s1019_s8 }
 0x184   :  { %345 = vsyncpa [#allocation5], 1 }
 0x185   :  { %347 = vsyncpa [#allocation5 + $0x1], 1 }
 0x186   :  { %348 = vsyncpa [#allocation8], 1 }
 0x187   :  { %350 = vsyncpa [#allocation8 + $0x1], 1 }
 0x188   :  { %351 = vsyncpa [#allocation6], 1 }
 0x189   :  { %353 = vsyncpa [#allocation6 + $0x1], 1 }

</bundles_post_ra>
